<compile_context>
chip_gen: v5e
topology: v5e:2x2
jax: 0.10.0
libtpu: 0.0.40
codegen_flags: <defaults>
</compile_context>

<pallas_src>
import functools

import jax
import jax.numpy as jnp
from jax.experimental import pallas as pl
from jax.experimental.pallas import tpu as pltpu

LANE = 128


def _round_up(x, m):
    return (x + m - 1) // m * m


def _wl1_kernel(o_ref, t_ref, w_ref, out_l_ref, out_w_ref, out_c_ref,
                acc_l, acc_w, acc_c, *, rows, need_mask):
    """Accumulate |o-t|*w, w, (w>0) elementwise into full-tile VMEM accumulators;
    reduce to per-split scalars only at the last step of the reduction axis."""
    c = pl.program_id(0)            # split index (parallel; both TCs on v7x)
    i = pl.program_id(1)            # streaming/reduction index (arbitrary)
    nblk = pl.num_programs(1)
    block_rows = acc_l.shape[0]

    @pl.when(i == 0)
    def _init():
        acc_l[...] = jnp.zeros_like(acc_l)
        acc_w[...] = jnp.zeros_like(acc_w)
        acc_c[...] = jnp.zeros_like(acc_c)

    o = o_ref[...].astype(jnp.float32)
    t = t_ref[...].astype(jnp.float32)
    w = w_ref[...].astype(jnp.float32)
    diff = jnp.abs(o - t)

    if need_mask:
        # Mask rows past the end of the slab (partial last block, or duplicated
        # clamped blocks when the split does not divide evenly).
        row_start = (c * nblk + i) * block_rows
        row_idx = row_start + jax.lax.broadcasted_iota(
            jnp.int32, (block_rows, LANE), 0)
        valid = row_idx < rows
        w = jnp.where(valid, w, 0.0)
        diff = jnp.where(valid, diff, 0.0)     # guard against non-finite garbage

    acc_l[...] += diff * w
    acc_w[...] += w
    acc_c[...] += (w > 0.0).astype(jnp.float32)

    @pl.when(i == nblk - 1)
    def _finalize():
        out_l_ref[0] = jnp.sum(acc_l[...], keepdims=True)
        out_w_ref[0] = jnp.sum(acc_w[...], keepdims=True)
        out_c_ref[0] = jnp.sum(acc_c[...], keepdims=True)


def weighted_l1_loss(out, target, weight, *, block_rows=1024, num_splits=2):
    """Pallas implementation of Weighted_L1_Loss.forward. Returns an f32 scalar."""
    assert out.shape == target.shape == weight.shape, "shapes must match (no broadcast)"
    n = out.size
    assert n > 0

    # Sublane alignment needed for a non-full block (f32: 8, bf16/f16: 16, 8-bit: 32).
    align = max(8 * max(1, 4 // jnp.dtype(x.dtype).itemsize)
                for x in (out, target, weight))

    rows = pl.cdiv(n, LANE)
    n_lane = rows * LANE

    def to_slab(x):
        x = x.reshape(-1)                      # free for contiguous arrays (no copy)
        if n_lane != n:                        # rare: only pad the lane tail
            x = jnp.pad(x, (0, n_lane - n))    # pad value 0 -> contributes nothing
        return x.reshape(rows, LANE)

    o2, t2, w2 = to_slab(out), to_slab(target), to_slab(weight)

    # Tile size: as large as requested, but never bigger than the slab.
    eff = _round_up(min(block_rows, rows), align)
    if eff >= rows:
        eff = rows                              # single full-extent block (always legal)
    blocks_total = pl.cdiv(rows, eff)
    bps = pl.cdiv(blocks_total, num_splits)     # blocks per split
    need_mask = (rows % eff != 0) or (blocks_total != num_splits * bps)

    def in_map(c, i):
        # Clamp so every grid step maps to an in-range block; fully-redundant
        # steps (uneven split) are zeroed by the in-kernel row mask.
        return (jnp.minimum(c * bps + i, blocks_total - 1), 0)

    def out_map(c, i):
        return (c, 0, 0)

    in_specs = [pl.BlockSpec((eff, LANE), in_map) for _ in range(3)]
    out_specs = [pl.BlockSpec((1, 1, 1), out_map) for _ in range(3)]
    out_shapes = (
        jax.ShapeDtypeStruct((num_splits, 1, 1), jnp.float32),  # sum(|o-t|*w)
        jax.ShapeDtypeStruct((num_splits, 1, 1), jnp.float32),  # sum(w)
        jax.ShapeDtypeStruct((num_splits, 1, 1), jnp.float32),  # sum(w > 0)
    )

    kernel = functools.partial(_wl1_kernel, rows=rows, need_mask=need_mask)

    res_l, res_w, res_c = pl.pallas_call(
        kernel,
        out_shape=out_shapes,
        grid_spec=pltpu.PrefetchScalarGridSpec(
            num_scalar_prefetch=0,
            grid=(num_splits, bps),
            in_specs=in_specs,
            out_specs=tuple(out_specs),
            scratch_shapes=[
                pltpu.VMEM((eff, LANE), jnp.float32),   # loss accumulator
                pltpu.VMEM((eff, LANE), jnp.float32),   # weight-sum accumulator
                pltpu.VMEM((eff, LANE), jnp.float32),   # count accumulator
            ],
        ),
        compiler_params=pltpu.CompilerParams(
            dimension_semantics=("parallel", "arbitrary"),
            vmem_limit_bytes=32 * 1024 * 1024,
        ),
    )(o2, t2, w2)

    l_sum = jnp.sum(res_l)
    w_sum = jnp.sum(res_w)
    cnt = jnp.sum(res_c)
    # Matches reference exactly: sum/count when weight.sum() > 0, else sum * 0
    # (the `* 0.0` branch propagates non-finite loss values like the PyTorch code).
    return jnp.where(w_sum > 0.0, l_sum / jnp.maximum(cnt, 1.0), l_sum * 0.0)


def _reference(out, target, weight):
    out = out.astype(jnp.float32)
    target = target.astype(jnp.float32)
    weight = weight.astype(jnp.float32)
    loss = jnp.abs(out - target) * weight
    cnt = jnp.sum((weight > 0).astype(jnp.float32))
    return jnp.where(jnp.sum(weight) > 0,
                     jnp.sum(loss) / jnp.maximum(cnt, 1.0),
                     jnp.sum(loss) * 0.0)


if __name__ == "__main__":
    key = jax.random.PRNGKey(0)
    k1, k2, k3 = jax.random.split(key, 3)

    # offset map: batch=2, 2 offset channels (dx, dy), 16x16 spatial (NCHW)
    shape = (2, 2, 16, 16)
    out = jax.random.normal(k1, shape, dtype=jnp.float32)
    target = jax.random.normal(k2, shape, dtype=jnp.float32)
    w_raw = jax.random.uniform(k3, shape, dtype=jnp.float32)
    weight = jnp.where(w_raw > 0.5, w_raw, 0.0)

    loss = jax.block_until_ready(weighted_l1_loss(out, target, weight))
    ref = jax.block_until_ready(_reference(out, target, weight))
    assert jnp.allclose(loss, ref, rtol=1e-5, atol=1e-6), (loss, ref)

    # all-zero-weight branch (loss must be exactly 0)
    loss0 = jax.block_until_ready(
        weighted_l1_loss(out, target, jnp.zeros(shape, jnp.float32)))
    assert jnp.allclose(loss0, 0.0), loss0

    # ragged size: exercises lane-tail padding + clamped index map + row mask
    shape2 = (2, 2, 15, 13)
    o2 = jax.random.normal(k1, shape2, dtype=jnp.float32)
    t2 = jax.random.normal(k2, shape2, dtype=jnp.float32)
    w2r = jax.random.uniform(k3, shape2, dtype=jnp.float32)
    w2 = jnp.where(w2r > 0.5, w2r, 0.0)
    l2 = jax.block_until_ready(weighted_l1_loss(o2, t2, w2))
    r2 = jax.block_until_ready(_reference(o2, t2, w2))
    assert jnp.allclose(l2, r2, rtol=1e-5, atol=1e-6), (l2, r2)

    # multi-block, evenly-split path (no masking traced)
    shape3 = (2, 4, 32, 32)
    o3 = jax.random.normal(k1, shape3, dtype=jnp.float32)
    t3 = jax.random.normal(k2, shape3, dtype=jnp.float32)
    w3r = jax.random.uniform(k3, shape3, dtype=jnp.float32)
    w3 = jnp.where(w3r > 0.5, w3r, 0.0)
    l3 = jax.block_until_ready(weighted_l1_loss(o3, t3, w3, block_rows=16))
    r3 = jax.block_until_ready(_reference(o3, t3, w3))
    assert jnp.allclose(l3, r3, rtol=1e-5, atol=1e-6), (l3, r3)

    print("KERNEL_OK")
</pallas_src>

<mosaic_0001>
module attributes {stable_mosaic.version = 11 : i64} {
  func.func @_wl1_kernel(%arg0: i32, %arg1: i32, %arg2: memref<8x128xf32, #tpu.memory_space<vmem>>, %arg3: memref<8x128xf32, #tpu.memory_space<vmem>>, %arg4: memref<8x128xf32, #tpu.memory_space<vmem>>, %arg5: memref<1x1x1xf32, #tpu.memory_space<vmem>>, %arg6: memref<1x1x1xf32, #tpu.memory_space<vmem>>, %arg7: memref<1x1x1xf32, #tpu.memory_space<vmem>>, %arg8: memref<8x128xf32, #tpu.memory_space<vmem>>, %arg9: memref<8x128xf32, #tpu.memory_space<vmem>>, %arg10: memref<8x128xf32, #tpu.memory_space<vmem>>) attributes {dimension_semantics = [#tpu.dimension_semantics<parallel>, #tpu.dimension_semantics<arbitrary>], iteration_bounds = array<i64: 2, 1>, scalar_prefetch = 0 : i64, scratch_operands = 3 : i64, tpu.core_type = #tpu.core_type<tc>, window_params = [{transform_indices = @transform_0, window_bounds = array<i64: 8, 128>}, {transform_indices = @transform_1, window_bounds = array<i64: 8, 128>}, {transform_indices = @transform_2, window_bounds = array<i64: 8, 128>}, {transform_indices = @transform_3, window_bounds = array<i64: 1, 1, 1>}, {transform_indices = @transform_4, window_bounds = array<i64: 1, 1, 1>}, {transform_indices = @transform_5, window_bounds = array<i64: 1, 1, 1>}]} {
    %c0_i32 = arith.constant 0 : i32
    %0 = arith.cmpi eq, %arg1, %c0_i32 : i32
    %1 = arith.extui %0 : i1 to i32
    %c0_i32_0 = arith.constant 0 : i32
    %2 = arith.cmpi ne, %1, %c0_i32_0 : i32
    scf.if %2 {
      %cst_23 = arith.constant 0.000000e+00 : f32
      %37 = vector.broadcast %cst_23 : f32 to vector<8x128xf32>
      %c0_24 = arith.constant 0 : index
      %c0_25 = arith.constant 0 : index
      %38 = vector.load %arg8[%c0_24, %c0_25] : memref<8x128xf32, #tpu.memory_space<vmem>>, vector<8x128xf32>
      tpu.vector_store %arg8[%c0_24, %c0_25], %37 {strides = array<i32>} : memref<8x128xf32, #tpu.memory_space<vmem>>, vector<8x128xf32>,
      %cst_26 = arith.constant 0.000000e+00 : f32
      %39 = vector.broadcast %cst_26 : f32 to vector<8x128xf32>
      %c0_27 = arith.constant 0 : index
      %c0_28 = arith.constant 0 : index
      %40 = vector.load %arg9[%c0_27, %c0_28] : memref<8x128xf32, #tpu.memory_space<vmem>>, vector<8x128xf32>
      tpu.vector_store %arg9[%c0_27, %c0_28], %39 {strides = array<i32>} : memref<8x128xf32, #tpu.memory_space<vmem>>, vector<8x128xf32>,
      %cst_29 = arith.constant 0.000000e+00 : f32
      %41 = vector.broadcast %cst_29 : f32 to vector<8x128xf32>
      %c0_30 = arith.constant 0 : index
      %c0_31 = arith.constant 0 : index
      %42 = vector.load %arg10[%c0_30, %c0_31] : memref<8x128xf32, #tpu.memory_space<vmem>>, vector<8x128xf32>
      tpu.vector_store %arg10[%c0_30, %c0_31], %41 {strides = array<i32>} : memref<8x128xf32, #tpu.memory_space<vmem>>, vector<8x128xf32>,
    } else {
    }
    %c0 = arith.constant 0 : index
    %c0_1 = arith.constant 0 : index
    %3 = vector.load %arg2[%c0, %c0_1] : memref<8x128xf32, #tpu.memory_space<vmem>>, vector<8x128xf32>
    %c0_2 = arith.constant 0 : index
    %c0_3 = arith.constant 0 : index
    %4 = vector.load %arg3[%c0_2, %c0_3] : memref<8x128xf32, #tpu.memory_space<vmem>>, vector<8x128xf32>
    %c0_4 = arith.constant 0 : index
    %c0_5 = arith.constant 0 : index
    %5 = vector.load %arg4[%c0_4, %c0_5] : memref<8x128xf32, #tpu.memory_space<vmem>>, vector<8x128xf32>
    %6 = arith.subf %3, %4 : vector<8x128xf32>
    %7 = math.absf %6 : vector<8x128xf32>
    %c1_i32 = arith.constant 1 : i32
    %8 = arith.muli %arg0, %c1_i32 : i32
    %9 = arith.addi %8, %arg1 : i32
    %c8_i32 = arith.constant 8 : i32
    %10 = arith.muli %9, %c8_i32 : i32
    %11 = tpu.iota {dimensions = array<i32: 0>} : vector<8x128xi32>
    %12 = vector.broadcast %10 : i32 to vector<8x128xi32>
    %13 = arith.addi %12, %11 : vector<8x128xi32>
    %c8_i32_6 = arith.constant 8 : i32
    %14 = vector.broadcast %c8_i32_6 : i32 to vector<8x128xi32>
    %15 = arith.cmpi slt, %13, %14 : vector<8x128xi32>
    %cst = arith.constant 0.000000e+00 : f32
    %16 = vector.broadcast %cst : f32 to vector<8x128xf32>
    %17 = arith.select %15, %5, %16 : vector<8x128xi1>, vector<8x128xf32>
    %cst_7 = arith.constant 0.000000e+00 : f32
    %18 = vector.broadcast %cst_7 : f32 to vector<8x128xf32>
    %19 = arith.select %15, %7, %18 : vector<8x128xi1>, vector<8x128xf32>
    %c0_8 = arith.constant 0 : index
    %c0_9 = arith.constant 0 : index
    %20 = vector.load %arg8[%c0_8, %c0_9] : memref<8x128xf32, #tpu.memory_space<vmem>>, vector<8x128xf32>
    %21 = arith.mulf %19, %17 : vector<8x128xf32>
    %22 = arith.addf %20, %21 : vector<8x128xf32>
    %c0_10 = arith.constant 0 : index
    %c0_11 = arith.constant 0 : index
    %23 = vector.load %arg8[%c0_10, %c0_11] : memref<8x128xf32, #tpu.memory_space<vmem>>, vector<8x128xf32>
    tpu.vector_store %arg8[%c0_10, %c0_11], %22 {strides = array<i32>} : memref<8x128xf32, #tpu.memory_space<vmem>>, vector<8x128xf32>,
    %c0_12 = arith.constant 0 : index
    %c0_13 = arith.constant 0 : index
    %24 = vector.load %arg9[%c0_12, %c0_13] : memref<8x128xf32, #tpu.memory_space<vmem>>, vector<8x128xf32>
    %25 = arith.addf %24, %17 : vector<8x128xf32>
    %c0_14 = arith.constant 0 : index
    %c0_15 = arith.constant 0 : index
    %26 = vector.load %arg9[%c0_14, %c0_15] : memref<8x128xf32, #tpu.memory_space<vmem>>, vector<8x128xf32>
    tpu.vector_store %arg9[%c0_14, %c0_15], %25 {strides = array<i32>} : memref<8x128xf32, #tpu.memory_space<vmem>>, vector<8x128xf32>,
    %c0_16 = arith.constant 0 : index
    %c0_17 = arith.constant 0 : index
    %27 = vector.load %arg10[%c0_16, %c0_17] : memref<8x128xf32, #tpu.memory_space<vmem>>, vector<8x128xf32>
    %cst_18 = arith.constant 0.000000e+00 : f32
    %28 = vector.broadcast %cst_18 : f32 to vector<8x128xf32>
    %29 = arith.cmpf ogt, %17, %28 : vector<8x128xf32>
    %30 = arith.extui %29 : vector<8x128xi1> to vector<8x128xi32>
    %31 = arith.sitofp %30 : vector<8x128xi32> to vector<8x128xf32>
    %32 = arith.addf %27, %31 : vector<8x128xf32>
    %c0_19 = arith.constant 0 : index
    %c0_20 = arith.constant 0 : index
    %33 = vector.load %arg10[%c0_19, %c0_20] : memref<8x128xf32, #tpu.memory_space<vmem>>, vector<8x128xf32>
    tpu.vector_store %arg10[%c0_19, %c0_20], %32 {strides = array<i32>} : memref<8x128xf32, #tpu.memory_space<vmem>>, vector<8x128xf32>,
    %c0_i32_21 = arith.constant 0 : i32
    %34 = arith.cmpi eq, %arg1, %c0_i32_21 : i32
    %35 = arith.extui %34 : i1 to i32
    %c0_i32_22 = arith.constant 0 : i32
    %36 = arith.cmpi ne, %35, %c0_i32_22 : i32
    scf.if %36 {
      %c0_23 = arith.constant 0 : index
      %c0_24 = arith.constant 0 : index
      %37 = vector.load %arg8[%c0_23, %c0_24] : memref<8x128xf32, #tpu.memory_space<vmem>>, vector<8x128xf32>
      %38 = vector.shape_cast %37 : vector<8x128xf32> to vector<1x8x128xf32>
      %cst_25 = arith.constant dense<0.000000e+00> : vector<1xf32>
      %39 = vector.multi_reduction <add>, %38, %cst_25 [1, 2] : vector<1x8x128xf32> to vector<1xf32>
      %40 = vector.shape_cast %39 : vector<1xf32> to vector<1x1x1xf32>
      %41 = vector.extract %40[0, 0, 0] : f32 from vector<1x1x1xf32>
      %42 = vector.broadcast %41 : f32 to vector<1x1xf32>
      %c0_26 = arith.constant 0 : index
      %c0_27 = arith.constant 0 : index
      %c0_28 = arith.constant 0 : index
      %43 = vector.load %arg5[%c0_26, %c0_27, %c0_28] : memref<1x1x1xf32, #tpu.memory_space<vmem>>, vector<1x1x1xf32>
      %44 = vector.shape_cast %43 : vector<1x1x1xf32> to vector<1x1xf32>
      %45 = vector.shape_cast %42 : vector<1x1xf32> to vector<1x1x1xf32>
      tpu.vector_store %arg5[%c0_26, %c0_27, %c0_28], %45 {strides = array<i32>} : memref<1x1x1xf32, #tpu.memory_space<vmem>>, vector<1x1x1xf32>,
      %c0_29 = arith.constant 0 : index
      %c0_30 = arith.constant 0 : index
      %46 = vector.load %arg9[%c0_29, %c0_30] : memref<8x128xf32, #tpu.memory_space<vmem>>, vector<8x128xf32>
      %47 = vector.shape_cast %46 : vector<8x128xf32> to vector<1x8x128xf32>
      %cst_31 = arith.constant dense<0.000000e+00> : vector<1xf32>
      %48 = vector.multi_reduction <add>, %47, %cst_31 [1, 2] : vector<1x8x128xf32> to vector<1xf32>
      %49 = vector.shape_cast %48 : vector<1xf32> to vector<1x1x1xf32>
      %50 = vector.extract %49[0, 0, 0] : f32 from vector<1x1x1xf32>
      %51 = vector.broadcast %50 : f32 to vector<1x1xf32>
      %c0_32 = arith.constant 0 : index
      %c0_33 = arith.constant 0 : index
      %c0_34 = arith.constant 0 : index
      %52 = vector.load %arg6[%c0_32, %c0_33, %c0_34] : memref<1x1x1xf32, #tpu.memory_space<vmem>>, vector<1x1x1xf32>
      %53 = vector.shape_cast %52 : vector<1x1x1xf32> to vector<1x1xf32>
      %54 = vector.shape_cast %51 : vector<1x1xf32> to vector<1x1x1xf32>
      tpu.vector_store %arg6[%c0_32, %c0_33, %c0_34], %54 {strides = array<i32>} : memref<1x1x1xf32, #tpu.memory_space<vmem>>, vector<1x1x1xf32>,
      %c0_35 = arith.constant 0 : index
      %c0_36 = arith.constant 0 : index
      %55 = vector.load %arg10[%c0_35, %c0_36] : memref<8x128xf32, #tpu.memory_space<vmem>>, vector<8x128xf32>
      %56 = vector.shape_cast %55 : vector<8x128xf32> to vector<1x8x128xf32>
      %cst_37 = arith.constant dense<0.000000e+00> : vector<1xf32>
      %57 = vector.multi_reduction <add>, %56, %cst_37 [1, 2] : vector<1x8x128xf32> to vector<1xf32>
      %58 = vector.shape_cast %57 : vector<1xf32> to vector<1x1x1xf32>
      %59 = vector.extract %58[0, 0, 0] : f32 from vector<1x1x1xf32>
      %60 = vector.broadcast %59 : f32 to vector<1x1xf32>
      %c0_38 = arith.constant 0 : index
      %c0_39 = arith.constant 0 : index
      %c0_40 = arith.constant 0 : index
      %61 = vector.load %arg7[%c0_38, %c0_39, %c0_40] : memref<1x1x1xf32, #tpu.memory_space<vmem>>, vector<1x1x1xf32>
      %62 = vector.shape_cast %61 : vector<1x1x1xf32> to vector<1x1xf32>
      %63 = vector.shape_cast %60 : vector<1x1xf32> to vector<1x1x1xf32>
      tpu.vector_store %arg7[%c0_38, %c0_39, %c0_40], %63 {strides = array<i32>} : memref<1x1x1xf32, #tpu.memory_space<vmem>>, vector<1x1x1xf32>,
    } else {
    }
    return
  }
  func.func @transform_0(%arg0: i32, %arg1: i32) -> (i32, i32) {
    %c1_i32 = arith.constant 1 : i32
    %0 = arith.muli %arg0, %c1_i32 : i32
    %1 = arith.addi %0, %arg1 : i32
    %c0_i32 = arith.constant 0 : i32
    %2 = arith.minsi %1, %c0_i32 : i32
    %c0_i32_0 = arith.constant 0 : i32
    %c0_i32_1 = arith.constant 0 : i32
    return %2, %c0_i32_0 : i32, i32
  }
  func.func @transform_1(%arg0: i32, %arg1: i32) -> (i32, i32) {
    %c1_i32 = arith.constant 1 : i32
    %0 = arith.muli %arg0, %c1_i32 : i32
    %1 = arith.addi %0, %arg1 : i32
    %c0_i32 = arith.constant 0 : i32
    %2 = arith.minsi %1, %c0_i32 : i32
    %c0_i32_0 = arith.constant 0 : i32
    %c0_i32_1 = arith.constant 0 : i32
    return %2, %c0_i32_0 : i32, i32
  }
  func.func @transform_2(%arg0: i32, %arg1: i32) -> (i32, i32) {
    %c1_i32 = arith.constant 1 : i32
    %0 = arith.muli %arg0, %c1_i32 : i32
    %1 = arith.addi %0, %arg1 : i32
    %c0_i32 = arith.constant 0 : i32
    %2 = arith.minsi %1, %c0_i32 : i32
    %c0_i32_0 = arith.constant 0 : i32
    %c0_i32_1 = arith.constant 0 : i32
    return %2, %c0_i32_0 : i32, i32
  }
  func.func @transform_3(%arg0: i32, %arg1: i32) -> (i32, i32, i32) {
    %c0_i32 = arith.constant 0 : i32
    %c0_i32_0 = arith.constant 0 : i32
    %c0_i32_1 = arith.constant 0 : i32
    return %arg0, %c0_i32, %c0_i32_0 : i32, i32, i32
  }
  func.func @transform_4(%arg0: i32, %arg1: i32) -> (i32, i32, i32) {
    %c0_i32 = arith.constant 0 : i32
    %c0_i32_0 = arith.constant 0 : i32
    %c0_i32_1 = arith.constant 0 : i32
    return %arg0, %c0_i32, %c0_i32_0 : i32, i32, i32
  }
  func.func @transform_5(%arg0: i32, %arg1: i32) -> (i32, i32, i32) {
    %c0_i32 = arith.constant 0 : i32
    %c0_i32_0 = arith.constant 0 : i32
    %c0_i32_1 = arith.constant 0 : i32
    return %arg0, %c0_i32, %c0_i32_0 : i32, i32, i32
  }
}

</mosaic_0001>

<bundles_post_ra>
// kernel: tpu_custom_call.1
= control target key start
LH: loop header
LB: loop body
LE: loop exit
PB: predicated region body
PF: predicated region fallthrough
CT: control target
= control target key end

     0   :  { %11 = vsyncpa [#allocation6], 0  ;;  %s1009_s0 = inlined_call_operand.hbm [shape: f32[8,128], index: 0, kind: input, shape index: {}]   ;;  %s1010_s1 = inlined_call_operand.hbm [shape: f32[8,128], index: 1, kind: input, shape index: {}]   ;;  %s1011_s2 = inlined_call_operand.hbm [shape: f32[8,128], index: 2, kind: input, shape index: {}]   ;;  %s1012_s3 = inlined_call_operand.vmem [shape: f32[2,1,1], index: 3, kind: output, shape index: {0}]   ;;  %s1013_s4 = inlined_call_operand.vmem [shape: f32[2,1,1], index: 4, kind: output, shape index: {1}]   ;;  %s1014_s5 = inlined_call_operand.vmem [shape: f32[2,1,1], index: 5, kind: output, shape index: {2}]  }
   0x1   :  { %13 = vsyncpa [#allocation6 + $0x1], 0 }
   0x2   :  { %14 = vsyncpa [#allocation8], 0 }
   0x3   :  { %16 = vsyncpa [#allocation8 + $0x1], 0  ;;  %s881_s18 = smov 0   ;;  %s883_s19 = smov 0  }
   0x4   :  { %s885_s20 = smov 0   ;;  %s887_s21 = smov 0  }
   0x5   :  { %s889_s22 = smov 0  }
   0x6 LB: > { %s614_s23 = sadd.s32 4294967295, %s845_s22   ;;  %s34_s24 = sadd.s32 1, %s841_s21  ;;  %s845_s22 = sphi %s889_s22, %s22_s22   ;;  %s841_s21 = sphi %s887_s21, %s1020_s21   ;;  %s837_s20 = sphi %s885_s20, %s1019_s20   ;;  %s833_s19 = sphi %s883_s19, %s999_s19   ;;  %s829_s18 = sphi %s881_s18, %s1018_s18  }
   0x7   : > { %p36_p0 = scmp.ge.s32.totalorder %s34_s24, 2  ;;  %p826_p1 = scmp.ne.s32.totalorder %s833_s19, 0 }
   0x8   : > { %p55_p2 = scmp.eq.s32.totalorder %s845_s22, 0  ;;  %p60_p3 = scmp.ne.s32.totalorder %s833_s19, %s829_s18 }
   0x9   : > { %s1022_s24 = smov (%p36_p0, %s34_s24), 0  ;;  %p61_p4 = scmp.eq.s32.totalorder %s614_s23, 0 }
   0xa   : > { %p56_p5 = por %p826_p1, %p55_p2  ;;  %p654_p7 = scmp.lt.s32.totalorder %s845_s22, 2 }
   0xb   : > { %p913_p6 = por %p61_p4, %p60_p3  ;;  %s248_s27 = sand.u32 1, %s845_s22  }
   0xc   : > { %p918_p8 = pnand %p654_p7, %p56_p5  ;;  %s847_s28 = smov [#allocation7]  }
   0xd   : > { %s263_s29 = sshll.u32 %s847_s28, 4  ;;  %s261_s7 = sshll.u32 %s1010_s1, 4  ;;  %s264_s29 = int_to_ptr.vmem [resolvable:$true] %s263_s29  ;;  %s262_s7 = int_to_ptr.hbm [resolvable:$true] %s261_s7 }
   0xe   : > { %p624_p9 = scmp.ge.s32.totalorder %s845_s22, 1  ;;  %s927_s8 = scalar_lea.sflag [#allocation8], %s248_s27 }
   0xf   : > { %s704_s9 = sshra.s32 %s262_s7, 4  ;;  %p708_p11 = pneg %p918_p8  ;;  %s705_s9 = int_to_ptr.hbm [resolvable:$true] %s704_s9 }
  0x10   : > { %s706_s10 = scalar_lea.hbm %s705_s9, 8  ;;  %s711_s13 = scalar_lea.hbm %s1010_s1, 8 }
  0x11   : > { %p707_p10 = scmp.ne.s32.totalorder %s705_s9, %s706_s10  ;;  %p713_p0 = scmp.lt.s32.totalorder %s711_s13, %s706_s10 }
  0x13   : > { %p709_p12 = pnand %p708_p11, %p707_p10 }
  0x15   : > { %p710_p13 = pneg %p709_p12 }
  0x17   : > { %p715_p1 = pnand %p713_p0, %p710_p13 }
  0x19   : > { %718 = shalt.err (!%p715_p1)
}
  0x1a   : > { %650 = dma.hbm_to_vmem [thread:$0]  (!%p918_p8), %s262_s7, 128, %s264_s29, %s927_s8  }
  0x1b   : > { %p290_p2 = scmp.lt.s32.totalorder %s845_s22, 3  ;;  %s848_s15 = smov [#allocation5]  }
  0x1c   : > { %s241_s16 = sshll.u32 %s848_s15, 4  ;;  %s239_s27 = sshll.u32 %s1009_s0, 4  ;;  %s242_s16 = int_to_ptr.vmem [resolvable:$true] %s241_s16  ;;  %s240_s27 = int_to_ptr.hbm [resolvable:$true] %s239_s27 }
  0x1d   : > { %p943_p3 = pnand %p624_p9, %p290_p2  ;;  %s734_s28 = sshra.s32 %s240_s27, 4  ;;  %s735_s28 = int_to_ptr.hbm [resolvable:$true] %s734_s28 }
  0x1e   : > { %s736_s30 = scalar_lea.hbm %s735_s28, 8  ;;  %s741_s7 = scalar_lea.hbm %s1009_s0, 8 }
  0x1f   : > { %p737_p4 = scmp.ne.s32.totalorder %s735_s28, %s736_s30  ;;  %p743_p9 = scmp.lt.s32.totalorder %s741_s7, %s736_s30 }
  0x21   : > { %p739_p5 = pnand %p737_p4, %p708_p11 }
  0x23   : > { %p740_p7 = pneg %p739_p5 }
  0x25   : > { %p745_p10 = pnand %p743_p9, %p740_p7 }
  0x27   : > { %748 = shalt.err (!%p745_p10)
}
  0x28   : > { %647 = dma.hbm_to_vmem [thread:$0]  (!%p918_p8), %s240_s27, 128, %s242_s16, [#allocation6]  }
  0x29   : > { %s849_s9 = smov [#allocation9]   ;;  %s283_s13 = sshll.u32 %s1011_s2, 4  ;;  %s284_s13 = int_to_ptr.hbm [resolvable:$true] %s283_s13 }
  0x2a   : > { %s285_s10 = sshll.u32 %s849_s9, 4  ;;  %s764_s15 = sshra.s32 %s284_s13, 4  ;;  %s286_s10 = int_to_ptr.vmem [resolvable:$true] %s285_s10  ;;  %s765_s15 = int_to_ptr.hbm [resolvable:$true] %s764_s15 }
  0x2b   : > { %s766_s17 = scalar_lea.hbm %s765_s15, 8  ;;  %s771_s16 = scalar_lea.hbm %s1011_s2, 8 }
  0x2c   : > { %p767_p12 = scmp.ne.s32.totalorder %s765_s15, %s766_s17  ;;  %p773_p1 = scmp.lt.s32.totalorder %s771_s16, %s766_s17 }
  0x2e   : > { %p769_p13 = pnand %p767_p12, %p708_p11 }
  0x30   : > { %p770_p0 = pneg %p769_p13 }
  0x32   : > { %p775_p2 = pnand %p773_p1, %p770_p0 }
  0x34   : > { %778 = shalt.err (!%p775_p2)
}
  0x35   : > { %653 = dma.hbm_to_vmem [thread:$0]  (!%p918_p8), %s284_s13, 128, %s286_s10, %s927_s8  }
  0x36   : > { %294 = sbr.rel (%p943_p3) target bundleno = 262 (0x106), region = 32  ;;  %s296_s27 = sand.u32 (!%p943_p3), 1, %s833_s19  }
  0x37   : > { %s625_s30 = sshll.u32 (!%p943_p3), %s296_s27, 3  ;;  %s297_s29 = scalar_lea.sflag (!%p943_p3), [#allocation6], %s296_s27 }
  0x38   : > { %s300_s6 = scalar_lea.vmem (!%p943_p3), [#allocation5], %s625_s30 }
  0x3b   : > { %819 = dma.done.wait (%p913_p6), %s297_s29, 128  }
  0x3c   : > { %821 = vsyncadd (%p913_p6), %s297_s29, 4294967168  ;;  %s306_s26 = sand.u32 1, %s614_s23   ;;  %s310_s8 = scalar_lea.vmem [#allocation7], %s625_s30 }
  0x3d   : > { %s307_s7 = scalar_lea.sflag [#allocation8], %s306_s26 }
  0x3e   : > { %823 = dma.done.wait (%p913_p6), %s307_s7, 256  }
  0x3f   : > { %825 = vsyncadd (%p913_p6), %s307_s7, 4294967040  ;;  %s628_s14 = sshll.u32 %s837_s20, 3  ;;  %v394_v0 = vlaneseq  ;;  %v387_v4 = vld [vmem:[%s300_s6] sm:$0xff]  ;;  %v388_v5 = vld [vmem:[%s310_s8] sm:$0xff]  ;;  %s320_s9 = scalar_lea.vmem [#allocation9], %s625_s30  ;;  %v850_v10 = vmov 0.0  }
  0x40   : > { %v396_v1 = vstv %s628_s14  ;;  %v389_v6 = vld [vmem:[%s320_s9] sm:$0xff]  ;;  %v390_v7 = vsub.f32 %v387_v4, %v388_v5  ;;  %p371_p6 = scmp.lt.s32.totalorder %s837_s20, 1  ;;  %vm428_vm2 = vcmask 0  }
  0x41   : > { %v395_v2 = vshrl.u32 %v394_v0, 7 }
  0x42   : > { %v391_v9 = vand.u32 2147483647, %v390_v7  ;;  %s1024_s20 = smov (!%p371_p6, %s837_s20), 1 }
  0x43   : > { %v397_v3 = vadd.s32 %v396_v1, %v395_v2  ;;  %s373_s10 = scalar_lea.vmem %s1012_s3, %s1024_s20  ;;  %s376_s15 = scalar_lea.vmem %s1013_s4, %s1024_s20 }
  0x44   : > { %s379_s16 = scalar_lea.vmem %s1014_s5, %s1024_s20 }
  0x45   : > { %vm398_vm0 = vcmp.lt.s32.totalorder %v397_v3, 8 }
  0x46   : > { %v399_v8 = vsel %vm398_vm0, %v389_v6, 0.0  ;;  %v400_v12 = vsel %vm398_vm0, %v391_v9, 0.0 }
  0x47   : > { %vm409_vm1 = vcmp.gt.f32.partialorder %v399_v8, 0.0  ;;  %v402_v13 = vmul.f32 %v400_v12, %v399_v8 }
  0x48   : > { %v629_v11 = vsel %vm409_vm1, 1.0, %v850_v10 }
  0x49   : > { %443 = vadd.xlane.f32.xlu1 %v629_v11  ;;  %418 = vadd.xlane.f32.xlu0 %v402_v13 }
  0x51   : > { %431 = vadd.xlane.f32.xlu0 %v399_v8 }
  0xbc   : > { %v444_v14 = vpop.xlane.xlu1 %443  ;;  %v419_v15 = vpop.xlane.xlu0 %418 }
  0xbd   : > { %v445_v16 = vrot.slane %v444_v14, 4  ;;  %v420_v17 = vrot.slane %v419_v15, 4 }
  0xbf   : > { %v421_v18 = vadd.f32 %v420_v17, %v419_v15  ;;  %v446_v19 = vadd.f32 %v445_v16, %v444_v14 }
  0xc1   : > { %v422_v20 = vrot.slane %v421_v18, 2  ;;  %v447_v22 = vrot.slane %v446_v19, 2 }
  0xc3   : > { %v423_v21 = vadd.f32 %v422_v20, %v421_v18  ;;  %v448_v28 = vadd.f32 %v447_v22, %v446_v19 }
  0xc4   : > { %v432_v23 = vpop.xlane.xlu0 %431 }
  0xc5   : > { %v433_v24 = vrot.slane %v432_v23, 4  ;;  %v424_v25 = vrot.slane %v423_v21, 1  ;;  %v449_v31 = vrot.slane %v448_v28, 1 }
  0xc7   : > { %v434_v26 = vadd.f32 %v433_v24, %v432_v23  ;;  %v425_v27 = vadd.f32 %v424_v25, %v423_v21  ;;  %v450_v34 = vadd.f32 %v449_v31, %v448_v28 }
  0xc9   : > { %v435_v29 = vrot.slane %v434_v26, 2  ;;  %632 = vpush %v425_v27 }
  0xcb   : > { %v436_v30 = vadd.f32 %v435_v29, %v434_v26 }
  0xcd   : > { %v437_v32 = vrot.slane %v436_v30, 1 }
  0xcf   : > { %v438_v33 = vadd.f32 %v437_v32, %v436_v30 }
  0xd1   : > { %634 = vpush %v438_v33 }
  0xd2   : > { %636 = vpush %v450_v34 }
  0xfa   : > { %s633_s11 = spop %632 }
  0xfb   : > { %v427_v35 = vstv %s633_s11 }
  0xfc   : > { %429 = vst.msk [vmem:[%s373_s10] sm:$0x1] %vm428_vm2, %v427_v35 }
 0x102   : > { %s635_s17 = spop %634 }
 0x103   : > { %v440_v36 = vstv %s635_s17  ;;  %s637_s27 = spop %636 }
 0x104   : > { %441 = vst.msk [vmem:[%s376_s15] sm:$0x1] %vm428_vm2, %v440_v36  ;;  %v452_v37 = vstv %s637_s27 }
 0x105   : > { %453 = vst.msk [vmem:[%s379_s16] sm:$0x1] %vm428_vm2, %v452_v37 }
 0x106 PF: > { %s22_s22 = sadd.s32 1, %s845_s22   ;;  %s1018_s18 = smov %s833_s19 }
 0x107   : > { %p19_p8 = scmp.ge.s32.totalorder %s22_s22, 4   ;;  %s999_s19 = smov 0  }
 0x108   : > { %s1019_s20 = smov %s841_s21  ;;  %s1020_s21 = smov %s1022_s24 }
 0x109   :  { %21 = sbr.rel (!%p19_p8) target bundleno = 6 (0x6), region = 128 }
 0x10e   :  { %495 = vsyncpa [#allocation6], 1 }
 0x10f   :  { %497 = vsyncpa [#allocation6 + $0x1], 1 }
 0x110   :  { %498 = vsyncpa [#allocation8], 1 }
 0x111   :  { %500 = vsyncpa [#allocation8 + $0x1], 1 }

</bundles_post_ra>
